<compile_context>
chip_gen: v7x
topology: tpu7x:2x2x1
jax: 0.10.0
libtpu: 0.0.40
codegen_flags: <defaults>
</compile_context>

<pallas_src>
import functools
import math

import jax
import jax.numpy as jnp
from jax import lax
from jax.experimental import pallas as pl
from jax.experimental.pallas import tpu as pltpu


def _round_up(x, m):
    return ((x + m - 1) // m) * m


# --------------------------------------------------------------------------
# Kernel
# --------------------------------------------------------------------------
def critic_kernel(obs_ref, act_ref,
                  w1o_ref, w1a_ref, b1_ref,
                  w2_ref, b2_ref,
                  w3_ref, b3_ref,
                  q_ref):
    """One batch tile of the fused twin-Q forward pass.

    Shapes (per tile): obs (TB,F), act (TB,A), w1o (F,2H), w1a (A,2H),
    b1/b2 (1,2H), w2 (2H,2H) block-diag, w3 (2H,2), b3 SMEM (2,),
    q_ref (TB,2) with q1 in column 0 and q2 in column 1.
    """
    # Layer 1: concat(obs, act) @ W1 == obs @ W1_obs + act @ W1_act
    h = (jnp.dot(obs_ref[...], w1o_ref[...], preferred_element_type=jnp.float32)
         + jnp.dot(act_ref[...], w1a_ref[...], preferred_element_type=jnp.float32)
         + b1_ref[...])
    h = jnp.maximum(h, 0.0)

    # Layer 2 (block-diagonal => the two heads stay independent).
    h = jnp.dot(h.astype(w2_ref.dtype), w2_ref[...],
                preferred_element_type=jnp.float32) + b2_ref[...]
    h = jnp.maximum(h, 0.0)

    # Layer 3: (TB, 2H) @ (2H, 2) -> (TB, 2).
    q = jnp.dot(h.astype(w3_ref.dtype), w3_ref[...],
                preferred_element_type=jnp.float32)

    # Final bias from SMEM (2 scalars), broadcast per output column.
    col = lax.broadcasted_iota(jnp.int32, q.shape, 1)
    q = q + jnp.where(col == 0, b3_ref[0], b3_ref[1])

    q_ref[...] = q.astype(q_ref.dtype)


# --------------------------------------------------------------------------
# Wrapper
# --------------------------------------------------------------------------
@functools.partial(jax.jit, static_argnames=("block_b", "compute_dtype"))
def critic_forward(obs, action, fused_params, *, block_b=256,
                   compute_dtype=jnp.float32):
    """obs: (B, F), action: (B, A). Returns (q1, q2), each (B, 1) float32.

    `fused_params` = (w1o, w1a, b1, w2, b2, w3, b3) from fuse_critic_params.
    `compute_dtype=jnp.bfloat16` enables bf16 matmul inputs with f32
    accumulation (biases / ReLU stay f32) for large-batch use on v6e/v7x.
    """
    w1o, w1a, b1, w2, b2, w3, b3 = fused_params
    B, feat = obs.shape
    act_dim = action.shape[1]
    h2 = w1o.shape[1]          # 2 * hidden_dim

    # Matmul operands may be bf16; bias adds / ReLU stay f32.
    obs = obs.astype(compute_dtype)
    action = action.astype(compute_dtype)
    w1o = w1o.astype(compute_dtype)
    w1a = w1a.astype(compute_dtype)
    w2 = w2.astype(compute_dtype)
    w3 = w3.astype(compute_dtype)
    b1 = b1.astype(jnp.float32)
    b2 = b2.astype(jnp.float32)
    b3 = jnp.reshape(b3, (2,)).astype(jnp.float32)

    # Batch tile: multiple of 8 (f32 sublane), capped at block_b.
    # (Sized well under v7x's 64 MiB VMEM even with double buffering.)
    tb = min(_round_up(B, 8), _round_up(block_b, 8))
    grid = (pl.cdiv(B, tb),)

    def batch_map(i):
        return (i, 0)

    def resident(i):            # weights: same block every step -> stays in VMEM
        return (0, 0)

    in_specs = [
        pl.BlockSpec((tb, feat), batch_map),
        pl.BlockSpec((tb, act_dim), batch_map),
        pl.BlockSpec((feat, h2), resident),
        pl.BlockSpec((act_dim, h2), resident),
        pl.BlockSpec((1, h2), resident),
        pl.BlockSpec((h2, h2), resident),
        pl.BlockSpec((1, h2), resident),
        pl.BlockSpec((h2, 2), resident),
        pl.BlockSpec(memory_space=pltpu.MemorySpace.SMEM),   # b3 (2,)
    ]
    out_specs = pl.BlockSpec((tb, 2), batch_map)
    out_shape = jax.ShapeDtypeStruct((B, 2), jnp.float32)

    q = pl.pallas_call(
        critic_kernel,
        grid=grid,
        in_specs=in_specs,
        out_specs=out_specs,
        out_shape=out_shape,
        compiler_params=pltpu.CompilerParams(
            dimension_semantics=("parallel",)),
    )(obs, action, w1o, w1a, b1, w2, b2, w3, b3)

    return q[:, 0:1], q[:, 1:2]


# --------------------------------------------------------------------------
# Parameter construction (matches PyTorch weight_init) and head fusion
# --------------------------------------------------------------------------
def _linear_init(key, in_dim, out_dim):
    """nn.Linear init from weight_init: trunc_normal(std, +-2*std), bias=0.
    Weight returned transposed to (in_dim, out_dim) for x @ W."""
    denoms = (in_dim + out_dim) / 2.0
    std = math.sqrt(1.0 / denoms) / 0.8796256610342398
    w = jax.random.truncated_normal(key, -2.0, 2.0, (in_dim, out_dim),
                                    dtype=jnp.float32) * std
    b = jnp.zeros((out_dim,), dtype=jnp.float32)
    return w, b


def make_critic_params(key, feat_dim, action_dim, hidden_dim):
    """Per-head ("raw") parameters: ((l1, l2, l3) for Q1, same for Q2)."""
    d = feat_dim + action_dim
    keys = jax.random.split(key, 6)
    q1 = (_linear_init(keys[0], d, hidden_dim),
          _linear_init(keys[1], hidden_dim, hidden_dim),
          _linear_init(keys[2], hidden_dim, 1))
    q2 = (_linear_init(keys[3], d, hidden_dim),
          _linear_init(keys[4], hidden_dim, hidden_dim),
          _linear_init(keys[5], hidden_dim, 1))
    return q1, q2


def fuse_critic_params(raw_params, feat_dim):
    """Pack the two Q heads into one set of block-structured weights."""
    q1, q2 = raw_params
    (w1a, b1a), (w2a, b2a), (w3a, b3a) = q1
    (w1b, b1b), (w2b, b2b), (w3b, b3b) = q2
    hid = w1a.shape[1]

    # Layer 1: split concat dim into obs / action parts, stack heads on lanes.
    w1o = jnp.concatenate([w1a[:feat_dim], w1b[:feat_dim]], axis=1)   # (F, 2H)
    w1c = jnp.concatenate([w1a[feat_dim:], w1b[feat_dim:]], axis=1)   # (A, 2H)
    b1 = jnp.concatenate([b1a, b1b])[None, :]                         # (1, 2H)

    # Layer 2: block-diagonal so heads stay independent.
    z = jnp.zeros((hid, hid), jnp.float32)
    w2 = jnp.concatenate(
        [jnp.concatenate([w2a, z], axis=1),
         jnp.concatenate([z, w2b], axis=1)], axis=0)                  # (2H, 2H)
    b2 = jnp.concatenate([b2a, b2b])[None, :]                         # (1, 2H)

    # Layer 3: column 0 = head 1, column 1 = head 2.
    z1 = jnp.zeros((hid, 1), jnp.float32)
    w3 = jnp.concatenate(
        [jnp.concatenate([w3a, z1], axis=1),
         jnp.concatenate([z1, w3b], axis=1)], axis=0)                 # (2H, 2)
    b3 = jnp.concatenate([b3a, b3b])                                  # (2,)

    return (w1o, w1c, b1, w2, b2, w3, b3)


def critic_reference(obs, action, raw_params):
    """Pure-JAX reference of the original (unfused) forward."""
    x = jnp.concatenate([obs, action], axis=1).astype(jnp.float32)

    def qf(p):
        (w1, b1), (w2, b2), (w3, b3) = p
        h = jnp.maximum(x @ w1 + b1, 0.0)
        h = jnp.maximum(h @ w2 + b2, 0.0)
        return h @ w3 + b3

    q1p, q2p = raw_params
    return qf(q1p), qf(q2p)


# --------------------------------------------------------------------------
# Self-test
# --------------------------------------------------------------------------
if __name__ == "__main__":
    # Shapes consistent with Critic(obs_shape, action_shape, ...):
    #   encoder_feature_dim=32, action_shape=(4,), hidden_dim=32, batch=8
    B, FEAT, ACT, HID = 8, 32, 4, 32

    key = jax.random.PRNGKey(0)
    k_obs, k_act, k_params, k_bias = jax.random.split(key, 4)
    obs = jax.random.normal(k_obs, (B, FEAT), dtype=jnp.float32)
    action = jax.random.normal(k_act, (B, ACT), dtype=jnp.float32)

    raw = make_critic_params(k_params, FEAT, ACT, HID)

    # weight_init zero-fills biases; perturb them here so the bias-add paths
    # (including the SMEM final bias) are actually exercised by the check.
    bkeys = jax.random.split(k_bias, 6)
    (q1p, q2p), out, i = raw, [], 0
    for head in (q1p, q2p):
        new_head = []
        for (w, b) in head:
            new_head.append((w, 0.1 * jax.random.normal(bkeys[i], b.shape,
                                                        dtype=jnp.float32)))
            i += 1
        out.append(tuple(new_head))
    raw = tuple(out)

    fused = fuse_critic_params(raw, FEAT)

    q1, q2 = critic_forward(obs, action, fused)
    q1 = jax.block_until_ready(q1)
    q2 = jax.block_until_ready(q2)

    r1, r2 = critic_reference(obs, action, raw)
    assert q1.shape == (B, 1) and q2.shape == (B, 1)
    assert jnp.allclose(q1, r1, atol=1e-5, rtol=1e-5)
    assert jnp.allclose(q2, r2, atol=1e-5, rtol=1e-5)

    print("KERNEL_OK")
</pallas_src>

<mosaic_0001>
module attributes {stable_mosaic.version = 11 : i64} {
  func.func @critic_kernel(%arg0: i32, %arg1: memref<8x32xf32, #tpu.memory_space<vmem>>, %arg2: memref<8x4xf32, #tpu.memory_space<vmem>>, %arg3: memref<32x64xf32, #tpu.memory_space<vmem>>, %arg4: memref<4x64xf32, #tpu.memory_space<vmem>>, %arg5: memref<1x64xf32, #tpu.memory_space<vmem>>, %arg6: memref<64x64xf32, #tpu.memory_space<vmem>>, %arg7: memref<1x64xf32, #tpu.memory_space<vmem>>, %arg8: memref<64x2xf32, #tpu.memory_space<vmem>>, %arg9: memref<2xf32, #tpu.memory_space<smem>>, %arg10: memref<8x2xf32, #tpu.memory_space<vmem>>) attributes {dimension_semantics = [#tpu.dimension_semantics<parallel>], iteration_bounds = array<i64: 1>, scalar_prefetch = 0 : i64, scratch_operands = 0 : i64, tpu.core_type = #tpu.core_type<tc>, window_params = [{transform_indices = @transform_0, window_bounds = array<i64: 8, 32>}, {transform_indices = @transform_1, window_bounds = array<i64: 8, 4>}, {pipeline_mode = #tpu.pipeline_mode<synchronous>, transform_indices = @transform_2, window_bounds = array<i64: 32, 64>}, {pipeline_mode = #tpu.pipeline_mode<synchronous>, transform_indices = @transform_3, window_bounds = array<i64: 4, 64>}, {pipeline_mode = #tpu.pipeline_mode<synchronous>, transform_indices = @transform_4, window_bounds = array<i64: 1, 64>}, {pipeline_mode = #tpu.pipeline_mode<synchronous>, transform_indices = @transform_5, window_bounds = array<i64: 64, 64>}, {pipeline_mode = #tpu.pipeline_mode<synchronous>, transform_indices = @transform_6, window_bounds = array<i64: 1, 64>}, {pipeline_mode = #tpu.pipeline_mode<synchronous>, transform_indices = @transform_7, window_bounds = array<i64: 64, 2>}, {transform_indices = @transform_8, window_bounds = array<i64: 2>}, {transform_indices = @transform_9, window_bounds = array<i64: 8, 2>}]} {
    %c0 = arith.constant 0 : index
    %c0_0 = arith.constant 0 : index
    %0 = vector.load %arg1[%c0, %c0_0] : memref<8x32xf32, #tpu.memory_space<vmem>>, vector<8x32xf32>
    %c0_1 = arith.constant 0 : index
    %c0_2 = arith.constant 0 : index
    %1 = vector.load %arg3[%c0_1, %c0_2] : memref<32x64xf32, #tpu.memory_space<vmem>>, vector<32x64xf32>
    %cst = arith.constant dense<0.000000e+00> : vector<8x64xf32>
    %2 = tpu.matmul %0, %1, %cst {dimension_numbers = #tpu.dot_dimension_numbers<[1], [0], [0], [1], [0, 0, 1, 1], [], []>} : vector<8x32xf32>, vector<32x64xf32>, vector<8x64xf32> -> vector<8x64xf32>
    %c0_3 = arith.constant 0 : index
    %c0_4 = arith.constant 0 : index
    %3 = vector.load %arg2[%c0_3, %c0_4] : memref<8x4xf32, #tpu.memory_space<vmem>>, vector<8x4xf32>
    %c0_5 = arith.constant 0 : index
    %c0_6 = arith.constant 0 : index
    %4 = vector.load %arg4[%c0_5, %c0_6] : memref<4x64xf32, #tpu.memory_space<vmem>>, vector<4x64xf32>
    %cst_7 = arith.constant dense<0.000000e+00> : vector<8x64xf32>
    %5 = tpu.matmul %3, %4, %cst_7 {dimension_numbers = #tpu.dot_dimension_numbers<[1], [0], [0], [1], [0, 0, 1, 1], [], []>} : vector<8x4xf32>, vector<4x64xf32>, vector<8x64xf32> -> vector<8x64xf32>
    %6 = arith.addf %2, %5 : vector<8x64xf32>
    %c0_8 = arith.constant 0 : index
    %c0_9 = arith.constant 0 : index
    %7 = vector.load %arg5[%c0_8, %c0_9] : memref<1x64xf32, #tpu.memory_space<vmem>>, vector<1x64xf32>
    %8 = vector.broadcast %7 : vector<1x64xf32> to vector<8x64xf32>
    %9 = arith.addf %6, %8 : vector<8x64xf32>
    %cst_10 = arith.constant 0.000000e+00 : f32
    %10 = vector.broadcast %cst_10 : f32 to vector<8x64xf32>
    %11 = arith.maximumf %9, %10 : vector<8x64xf32>
    %c0_11 = arith.constant 0 : index
    %c0_12 = arith.constant 0 : index
    %12 = vector.load %arg6[%c0_11, %c0_12] : memref<64x64xf32, #tpu.memory_space<vmem>>, vector<64x64xf32>
    %cst_13 = arith.constant dense<0.000000e+00> : vector<8x64xf32>
    %13 = tpu.matmul %11, %12, %cst_13 {dimension_numbers = #tpu.dot_dimension_numbers<[1], [0], [0], [1], [0, 0, 1, 1], [], []>} : vector<8x64xf32>, vector<64x64xf32>, vector<8x64xf32> -> vector<8x64xf32>
    %c0_14 = arith.constant 0 : index
    %c0_15 = arith.constant 0 : index
    %14 = vector.load %arg7[%c0_14, %c0_15] : memref<1x64xf32, #tpu.memory_space<vmem>>, vector<1x64xf32>
    %15 = vector.broadcast %14 : vector<1x64xf32> to vector<8x64xf32>
    %16 = arith.addf %13, %15 : vector<8x64xf32>
    %cst_16 = arith.constant 0.000000e+00 : f32
    %17 = vector.broadcast %cst_16 : f32 to vector<8x64xf32>
    %18 = arith.maximumf %16, %17 : vector<8x64xf32>
    %c0_17 = arith.constant 0 : index
    %c0_18 = arith.constant 0 : index
    %19 = vector.load %arg8[%c0_17, %c0_18] : memref<64x2xf32, #tpu.memory_space<vmem>>, vector<64x2xf32>
    %cst_19 = arith.constant dense<0.000000e+00> : vector<8x2xf32>
    %20 = tpu.matmul %18, %19, %cst_19 {dimension_numbers = #tpu.dot_dimension_numbers<[1], [0], [0], [1], [0, 0, 1, 1], [], []>} : vector<8x64xf32>, vector<64x2xf32>, vector<8x2xf32> -> vector<8x2xf32>
    %21 = tpu.iota {dimensions = array<i32: 1>} : vector<8x2xi32>
    %c0_i32 = arith.constant 0 : i32
    %22 = vector.broadcast %c0_i32 : i32 to vector<8x2xi32>
    %23 = arith.cmpi eq, %21, %22 : vector<8x2xi32>
    %c0_20 = arith.constant 0 : index
    %24 = memref.load %arg9[%c0_20] : memref<2xf32, #tpu.memory_space<smem>>
    %c1 = arith.constant 1 : index
    %25 = memref.load %arg9[%c1] : memref<2xf32, #tpu.memory_space<smem>>
    %26 = vector.broadcast %24 : f32 to vector<8x2xf32>
    %27 = vector.broadcast %25 : f32 to vector<8x2xf32>
    %28 = arith.select %23, %26, %27 : vector<8x2xi1>, vector<8x2xf32>
    %29 = arith.addf %20, %28 : vector<8x2xf32>
    %c0_21 = arith.constant 0 : index
    %c0_22 = arith.constant 0 : index
    %30 = vector.load %arg10[%c0_21, %c0_22] : memref<8x2xf32, #tpu.memory_space<vmem>>, vector<8x2xf32>
    tpu.vector_store %arg10[%c0_21, %c0_22], %29 {strides = array<i32>} : memref<8x2xf32, #tpu.memory_space<vmem>>, vector<8x2xf32>,
    return
  }
  func.func @transform_0(%arg0: i32) -> (i32, i32) {
    %c0_i32 = arith.constant 0 : i32
    %c0_i32_0 = arith.constant 0 : i32
    return %arg0, %c0_i32 : i32, i32
  }
  func.func @transform_1(%arg0: i32) -> (i32, i32) {
    %c0_i32 = arith.constant 0 : i32
    %c0_i32_0 = arith.constant 0 : i32
    return %arg0, %c0_i32 : i32, i32
  }
  func.func @transform_2(%arg0: i32) -> (i32, i32) {
    %c0_i32 = arith.constant 0 : i32
    %c0_i32_0 = arith.constant 0 : i32
    %c0_i32_1 = arith.constant 0 : i32
    return %c0_i32, %c0_i32_0 : i32, i32
  }
  func.func @transform_3(%arg0: i32) -> (i32, i32) {
    %c0_i32 = arith.constant 0 : i32
    %c0_i32_0 = arith.constant 0 : i32
    %c0_i32_1 = arith.constant 0 : i32
    return %c0_i32, %c0_i32_0 : i32, i32
  }
  func.func @transform_4(%arg0: i32) -> (i32, i32) {
    %c0_i32 = arith.constant 0 : i32
    %c0_i32_0 = arith.constant 0 : i32
    %c0_i32_1 = arith.constant 0 : i32
    return %c0_i32, %c0_i32_0 : i32, i32
  }
  func.func @transform_5(%arg0: i32) -> (i32, i32) {
    %c0_i32 = arith.constant 0 : i32
    %c0_i32_0 = arith.constant 0 : i32
    %c0_i32_1 = arith.constant 0 : i32
    return %c0_i32, %c0_i32_0 : i32, i32
  }
  func.func @transform_6(%arg0: i32) -> (i32, i32) {
    %c0_i32 = arith.constant 0 : i32
    %c0_i32_0 = arith.constant 0 : i32
    %c0_i32_1 = arith.constant 0 : i32
    return %c0_i32, %c0_i32_0 : i32, i32
  }
  func.func @transform_7(%arg0: i32) -> (i32, i32) {
    %c0_i32 = arith.constant 0 : i32
    %c0_i32_0 = arith.constant 0 : i32
    %c0_i32_1 = arith.constant 0 : i32
    return %c0_i32, %c0_i32_0 : i32, i32
  }
  func.func @transform_8(%arg0: i32) -> i32 {
    %c0_i32 = arith.constant 0 : i32
    %c0_i32_0 = arith.constant 0 : i32
    return %c0_i32 : i32
  }
  func.func @transform_9(%arg0: i32) -> (i32, i32) {
    %c0_i32 = arith.constant 0 : i32
    %c0_i32_0 = arith.constant 0 : i32
    return %arg0, %c0_i32 : i32, i32
  }
}

</mosaic_0001>

<bundles_post_ra>
// kernel: critic_forward.1
= control target key start
LH: loop header
LB: loop body
LE: loop exit
PB: predicated region body
PF: predicated region fallthrough
CT: control target
= control target key end

     0   :  { %14 = vsyncpa [#allocation3], 0  ;;  %s813_s0 = inlined_call_operand.hbm [shape: f32[8,32], index: 0, kind: input, shape index: {}]   ;;  %s814_s1 = inlined_call_operand.vmem [shape: f32[8,4], index: 1, kind: input, shape index: {}]   ;;  %s815_s2 = inlined_call_operand.vmem [shape: f32[32,64], index: 2, kind: input, shape index: {}]   ;;  %s816_s3 = inlined_call_operand.hbm [shape: f32[4,64], index: 3, kind: input, shape index: {}]   ;;  %s817_s4 = inlined_call_operand.hbm [shape: f32[1,64], index: 4, kind: input, shape index: {}]   ;;  %s818_s5 = inlined_call_operand.vmem [shape: f32[64,64], index: 5, kind: input, shape index: {}]   ;;  %s819_s6 = inlined_call_operand.vmem [shape: f32[1,64], index: 6, kind: input, shape index: {}]   ;;  %s820_s7 = inlined_call_operand.vmem [shape: f32[64,2], index: 7, kind: input, shape index: {}]   ;;  %s821_s8 = inlined_call_operand.vmem [shape: f32[2], index: 8, kind: input, shape index: {}]   ;;  %s822_s9 = inlined_call_operand.vmem [shape: f32[8,2], index: 9, kind: output, shape index: {}]  }
   0x1   :  { %15 = vsyncpa [#allocation6], 0 }
   0x2   :  { %16 = vsyncpa [#allocation4], 0  ;;  %s644_s30 = smov [#allocation5]   ;;  %s645_s11 = smov [#allocation2]  }
   0x3   :  { %s37_s10 = sshll.u32 %s644_s30, 4  ;;  %s23_s12 = sshll.u32 %s645_s11, 4  ;;  %s38_s10 = int_to_ptr.vmem [resolvable:$true] %s37_s10  ;;  %s24_s12 = int_to_ptr.vmem [resolvable:$true] %s23_s12 }
   0x4   :  { %s560_s15 = scalar_lea.hbm %s816_s3, 64 }
   0x5   :  { %p561_p0 = scmp.ne.s32.totalorder %s816_s3, %s560_s15  ;;  %p564_p1 = scmp.lt.u32.totalorder %s560_s15, %s816_s3 }
   0x7   :  { %p566_p2 = pnand %p564_p1, %p561_p0 }
   0x9   :  { %569 = shalt.err (!%p566_p2)
}
   0xa   :  { %s570_s20 = scalar_lea.vmem %s38_s10, 64  ;;  %p575_p4 = scmp.lt.s32.totalorder %s38_s10, %s38_s10 }
   0xb   :  { %p571_p3 = scmp.ne.s32.totalorder %s38_s10, %s570_s20  ;;  %p576_p5 = scmp.lt.s32.totalorder %s570_s20, %s570_s20 }
   0xd   :  { %p577_p6 = por %p576_p5, %p575_p4 }
   0xf   :  { %p578_p7 = pnand %p577_p6, %p571_p3 }
  0x11   :  { %581 = shalt.err (!%p578_p7)
}
  0x12   :  { %40 = dma.hbm_to_vmem [thread:$0]  %s816_s3, 64, %s38_s10, [#allocation6]  }
  0x13   :  { %s582_s25 = scalar_lea.hbm %s813_s0, 128 }
  0x14   :  { %p583_p8 = scmp.ne.s32.totalorder %s813_s0, %s582_s25  ;;  %p586_p9 = scmp.lt.u32.totalorder %s582_s25, %s813_s0 }
  0x16   :  { %p588_p10 = pnand %p586_p9, %p583_p8 }
  0x18   :  { %591 = shalt.err (!%p588_p10)
}
  0x19   :  { %s592_s30 = scalar_lea.vmem %s24_s12, 128  ;;  %p597_p12 = scmp.lt.s32.totalorder %s24_s12, %s24_s12 }
  0x1a   :  { %p593_p11 = scmp.ne.s32.totalorder %s24_s12, %s592_s30  ;;  %p598_p13 = scmp.lt.s32.totalorder %s592_s30, %s592_s30 }
  0x1c   :  { %p599_p0 = por %p598_p13, %p597_p12 }
  0x1e   :  { %p600_p1 = pnand %p599_p0, %p593_p11 }
  0x20   :  { %603 = shalt.err (!%p600_p1)
}
  0x21   :  { %26 = dma.hbm_to_vmem [thread:$0]  %s813_s0, 128, %s24_s12, [#allocation3]  }
  0x22   :  { %s63_s14 = sshll.u32 %s821_s8, 4  ;;  %s646_s15 = smov [#allocation7]   ;;  %s64_s14 = int_to_ptr.vmem [resolvable:$true] %s63_s14 }
  0x23   :  { %s47_s16 = sshll.u32 %s646_s15, 4  ;;  %s604_s19 = scalar_lea.hbm %s817_s4, 16  ;;  %s48_s16 = int_to_ptr.vmem [resolvable:$true] %s47_s16 }
  0x24   :  { %p605_p2 = scmp.ne.s32.totalorder %s817_s4, %s604_s19  ;;  %p608_p3 = scmp.lt.u32.totalorder %s604_s19, %s817_s4 }
  0x26   :  { %p610_p4 = pnand %p608_p3, %p605_p2 }
  0x28   :  { %613 = shalt.err (!%p610_p4)
}
  0x29   :  { %s614_s0 = scalar_lea.vmem %s48_s16, 16  ;;  %s618_s8 = scalar_lea.vmem %s48_s16, 32 }
  0x2a   :  { %p615_p5 = scmp.ne.s32.totalorder %s48_s16, %s614_s0  ;;  %p619_p6 = scmp.lt.s32.totalorder %s48_s16, %s48_s16 }
  0x2b   :  { %p620_p7 = scmp.lt.s32.totalorder %s618_s8, %s614_s0 }
  0x2d   :  { %p621_p8 = por %p620_p7, %p619_p6 }
  0x2f   :  { %p622_p9 = pnand %p621_p8, %p615_p5 }
  0x31   :  { %625 = shalt.err (!%p622_p9)
}
  0x32   :  { %50 = dma.hbm_to_vmem [thread:$0]  %s817_s4, 16, %s48_s16, [#allocation6]  }
  0x33   :  { %s626_s25 = scalar_lea.vmem %s64_s14, 16  ;;  %p631_p11 = scmp.lt.s32.totalorder %s64_s14, %s64_s14 }
  0x34   :  { %p627_p10 = scmp.ne.s32.totalorder %s64_s14, %s626_s25  ;;  %p632_p12 = scmp.lt.s32.totalorder %s626_s25, %s626_s25 }
  0x36   :  { %p633_p13 = por %p632_p12, %p631_p11 }
  0x38   :  { %p634_p0 = pnand %p633_p13, %p627_p10 }
  0x3a   :  { %637 = shalt.err (!%p634_p0)
}
  0x3b   :  { %s647_s26 = smov [#allocation8]  }
  0x3c   :  { %66 = dma.vmem_to_smem %s64_s14, 16, %s647_s26, [#allocation4]  }
  0x3d   :  { %638 = dma.done.wait [#allocation3], 128  }
  0x3e   :  { %639 = vsyncadd [#allocation3], 4294967168 }
  0x3f   :  { %640 = dma.done.wait [#allocation6], 80  }
  0x40   :  { %641 = vsyncadd [#allocation6], 4294967216 }
  0x41   :  { %642 = dma.done.wait [#allocation4], 16  }
  0x42   :  { %643 = vsyncadd [#allocation4], 4294967280 }
  0x43   :  { %79 = sfence }
  0x44   :  { %v81_v0 = vld [vmem:[%s815_s2] sm:$0xff]  ;;  %v82_v1 = vld [vmem:[%s815_s2 + $0x8] sm:$0xff]  ;;  %v83_v2 = vld [vmem:[%s815_s2 + $0x10] sm:$0xff]  ;;  %vm91_vm0 = vcmask 1043456   ;;  %v648_v3 = vmov 0.0|0.0   ;;  %v649_v5 = vmov 0.0   ;;  %v346_v48 = vlaneseq }
  0x45   :  { %523 = vmatprep.subr.bf16.mxu1 %v648_v3  ;;  %v524_v4 = vpack.c.bf16 %v82_v1, %v81_v0  ;;  %469 = vmatprep.subr.mxu0 %v649_v5  ;;  %v84_v6 = vld [vmem:[%s815_s2 + $0x18] sm:$0xff]  ;;  %v86_v7 = vld [vmem:[#allocation5] sm:$0xf]  ;;  %v85_v8 = vld [vmem:[%s814_s1] sm:$0xff]  ;;  %vm87_vm1 = vcmask 31744   ;;  %vm650_vm2 = vmmov 0  }
  0x46   :  { %470 = vmatpush3.msk.msra.mxu0 %vm91_vm0, %v86_v7  ;;  %471 = vmatprep.mubr.msk.f32.mxu0 %vm650_vm2, %v649_v5  ;;  %v248_v9 = vld [vmem:[%s818_s5] sm:$0xff]  ;;  %v249_v10 = vld [vmem:[%s818_s5 + $0x8] sm:$0xff]  ;;  %v527_v11 = vpack.c.bf16 %v84_v6, %v83_v2  ;;  %v250_v13 = vld [vmem:[%s818_s5 + $0x10] sm:$0xff]  ;;  %vm165_vm3 = vcmask 261120   ;;  %vm263_vm4 = vcmask 523264   ;;  %s349_s1 = sld [smem:[#allocation8]] }
  0x47   :  { %525 = vmatpush3.bf16.msra.mxu1 %v524_v4  ;;  %472 = vmatmul.mubr.msk.f32.vlgmr.msra.gmra.mrb[0].mxu0 %vm87_vm1, %v85_v8  ;;  %v530_v12 = vpack.c.bf16 %v249_v10, %v248_v9  ;;  %v251_v14 = vld [vmem:[%s818_s5 + $0x18] sm:$0xff]  ;;  %v80_v16 = vld [vmem:[#allocation2] sm:$0xff]  ;;  %v253_v18 = vld [vmem:[%s818_s5 + $0x28] sm:$0xff]  ;;  %s442_s20 = sld [smem:[#allocation8 + $0x1]]  ;;  %v347_v49 = vand.u32 127, %v346_v48  ;;  %vm427_vm6 = vcmask 15360  }
  0x48   :  { %526 = vmatprep.subr.bf16.mxu1 %v648_v3  ;;  %482 = vmatprep.mubr.msk.f32.mxu1 %vm650_vm2, %v649_v5  ;;  %v533_v15 = vpack.c.bf16 %v251_v14, %v250_v13  ;;  %v252_v17 = vld [vmem:[%s818_s5 + $0x20] sm:$0xff]  ;;  %v254_v20 = vld [vmem:[%s818_s5 + $0x30] sm:$0xff]  ;;  %v255_v21 = vld [vmem:[%s818_s5 + $0x38] sm:$0xff] }
  0x49   :  { %529 = vmatprep.subr.bf16.mxu0 %v648_v3  ;;  %501 = vmatprep.mubr.msk.f32.mxu0 %vm650_vm2, %v649_v5  ;;  %v536_v19 = vpack.c.bf16 %v253_v18, %v252_v17  ;;  %v539_v22 = vpack.c.bf16 %v255_v21, %v254_v20  ;;  %v338_v23 = vld [vmem:[%s820_s7] sm:$0xff]  ;;  %v339_v24 = vld [vmem:[%s820_s7 + $0x8] sm:$0xff]  ;;  %v340_v25 = vld [vmem:[%s820_s7 + $0x10] sm:$0xff]  ;;  %vm348_vm5 = vcmp.eq.s32.totalorder %v347_v49, 0 }
  0x4a   :  { %531 = vmatpush3.bf16.msra.mxu0 %v530_v12  ;;  %v542_v26 = vpack.c.bf16 %v339_v24, %v338_v23  ;;  %v341_v27 = vld [vmem:[%s820_s7 + $0x18] sm:$0xff]  ;;  %v342_v29 = vld [vmem:[%s820_s7 + $0x20] sm:$0xff]  ;;  %v343_v30 = vld [vmem:[%s820_s7 + $0x28] sm:$0xff] }
  0x4b   :  { %528 = vmatpush3.bf16.msra.mxu1 %v527_v11  ;;  %532 = vmatprep.subr.bf16.mxu0 %v648_v3  ;;  %v545_v28 = vpack.c.bf16 %v341_v27, %v340_v25  ;;  %v548_v31 = vpack.c.bf16 %v343_v30, %v342_v29  ;;  %v439_v35 = vld [vmem:[#allocation7] ss:$0 sm:$0xff]  ;;  %v344_v40 = vld [vmem:[%s820_s7 + $0x30] sm:$0xff]  ;;  %v345_v41 = vld [vmem:[%s820_s7 + $0x38] sm:$0xff] }
  0x4c   :  { %541 = vmatprep.subr.bf16.mxu1 %v648_v3  ;;  %v551_v42 = vpack.c.bf16 %v345_v41, %v344_v40  ;;  %v440_v43 = vld [vmem:[%s819_s6] ss:$0 sm:$0xff]  ;;  %v351_v50 = vstv %s349_s1 }
  0x4d   :  { %v352_v51 = vstv %s442_s20 }
  0x4e   :  { %483 = vmatmul.mubr.msk.f32.vlgmr.msra.gmra.mrb[0].mxu1 %vm165_vm3, %v80_v16  ;;  %534 = vmatpush3.bf16.msra.mxu0 %v533_v15  ;;  %v353_v52 = vsel %vm348_vm5, %v351_v50, %v352_v51 }
  0x4f   :  { %535 = vmatprep.subr.bf16.mxu0 %v648_v3  ;;  %520 = vmatprep.mubr.msk.f32.mxu1 %vm650_vm2, %v649_v5 }
  0x50   :  { %543 = vmatpush3.bf16.msra.mxu1 %v542_v26 }
  0x51   :  { %544 = vmatprep.subr.bf16.mxu1 %v648_v3 }
  0x52   :  { %537 = vmatpush3.bf16.msra.mxu0 %v536_v19 }
  0x53   :  { %538 = vmatprep.subr.bf16.mxu0 %v648_v3 }
  0x54   :  { %546 = vmatpush3.bf16.msra.mxu1 %v545_v28 }
  0x55   :  { %547 = vmatprep.subr.bf16.mxu1 %v648_v3 }
  0x56   :  { %540 = vmatpush3.bf16.msra.mxu0 %v539_v22 }
  0x58   :  { %549 = vmatpush3.bf16.msra.mxu1 %v548_v31 }
  0x59   :  { %550 = vmatprep.subr.bf16.mxu1 %v648_v3 }
  0x5c   :  { %552 = vmatpush3.bf16.msra.mxu1 %v551_v42 }
 0x11a   :  { %v161_v32 = vpop.f32.mrb[0].mxu0 }
 0x11b   :  { %v473_v33 = vpop.f32.mrb[1].mxu0 }
 0x121   :  { %v235_v34 = vpop.f32.mrb[0].mxu1 }
 0x122   :  { %v236_v36 = vadd.f32 %v235_v34, %v161_v32  ;;  %v484_v37 = vpop.f32.mrb[1].mxu1 }
 0x124   :  { %v246_v38 = vadd.f32 %v439_v35, %v236_v36 }
 0x126   :  { %v247_v39 = vmax.f32 %v246_v38, 0.0 }
 0x128   :  { %502 = vmatmul.mubr.msk.f32.vlgmr.msra.gmra.mrb[2].mxu0 %vm263_vm4, %v247_v39 }
 0x1fb   :  { %v333_v44 = vpop.f32.mrb[2].mxu0 }
 0x1fc   :  { %v334_v45 = vadd.f32 %v440_v43, %v333_v44  ;;  %v503_v46 = vpop.f32.mrb[3].mxu0 }
 0x1fe   :  { %v337_v47 = vmax.f32 %v334_v45, 0.0 }
 0x200   :  { %521 = vmatmul.mubr.msk.f32.vlgmr.msra.gmra.mrb[2].mxu1 %vm263_vm4, %v337_v47 }
 0x2d3   :  { %v423_v53 = vpop.f32.mrb[2].mxu1 }
 0x2d4   :  { %v424_v54 = vadd.f32 %v423_v53, %v353_v52  ;;  %v522_v55 = vpop.f32.mrb[3].mxu1 }
 0x2d6   :  { %428 = vst.msk [vmem:[%s822_s9] sm:$0xff] %vm427_vm6, %v424_v54 }
 0x2d7   :  { %433 = vsyncpa [#allocation3], 1 }
 0x2d8   :  { %434 = vsyncpa [#allocation6], 1 }
 0x2d9   :  { %435 = vsyncpa [#allocation4], 1 }

</bundles_post_ra>
